<compile_context>
chip_gen: v7x
topology: tpu7x:2x2x1
jax: 0.10.0
libtpu: 0.0.40
codegen_flags: <defaults>
</compile_context>

<pallas_src>
import functools

import jax
import jax.numpy as jnp
from jax.experimental import pallas as pl
from jax.experimental.pallas import tpu as pltpu


def _round_up(x, m):
    return (x + m - 1) // m * m


def moe_kernel(feat_ref, lab_ref, wg_ref, bg_ref, we_ref, bef_ref, out_ref, *,
               num_experts, output_dim):
    """One batch tile of the MoE forward pass.

    feat_ref : (Bt, F)        feature activations (f32 in HBM)
    lab_ref  : (Bt, L)        multilabel indicators (f32 in HBM)
    wg_ref   : (F+L, E)       fused gating weight (emb_w folded into label rows)
    bg_ref   : (1, E)         gating bias (f32)
    we_ref   : (F+L, E*O)     fused stacked expert weights (emb_w folded), E-major/O-minor
    bef_ref  : (1, E*O)       flattened expert biases, same E-major/O-minor order (f32)
    out_ref  : (Bt, O)
    """
    cdt = wg_ref.dtype                                   # MXU operand dtype (bf16 default)
    # Build the combined activation once (one K-tile, K = F + L).  The concat
    # rides otherwise-idle XLU/VPU slots instead of doubling MXU pushes.
    combined = jnp.concatenate([feat_ref[...], lab_ref[...]], axis=-1).astype(cdt)

    # Gating: one K=(F+L) matmul with f32 accumulation; sigmoid on the EUP.
    logits = (jnp.dot(combined, wg_ref[...], preferred_element_type=jnp.float32)
              + bg_ref[...])                              # (Bt, E) f32
    gate = jax.nn.sigmoid(logits)

    # All experts in one lane-dense (Bt, E*O) matmul; expert biases folded in
    # with a single sublane-broadcast VPU add (no gate @ bias MXU op).
    expert_flat = (jnp.dot(combined, we_ref[...], preferred_element_type=jnp.float32)
                   + bef_ref[...])                        # (Bt, E*O) f32

    # Gated mixture over experts: static 128-aligned lane slices -> free vreg
    # picks; pure f32 VPU FMAs (works on v5e which has no bf16 VPU).
    o = output_dim
    acc = gate[:, 0:1] * expert_flat[:, 0:o]
    for e in range(1, num_experts):
        acc = acc + gate[:, e:e + 1] * expert_flat[:, e * o:(e + 1) * o]

    out_ref[...] = acc.astype(out_ref.dtype)


def prepare_params(emb_w, gate_w, gate_b, exp_w, exp_b, compute_dtype=jnp.bfloat16):
    """Fold / fuse the PyTorch-layout parameters into kernel-friendly tensors.

    emb_w  : (L, embed_dim)   nn.Embedding.weight
    gate_w : (D, E)           gating Linear weight transposed (D = F + embed_dim)
    gate_b : (1, E)
    exp_w  : (E, D, O)        stacked expert Linear weights transposed
    exp_b  : (E, O)
    """
    E, D, O = exp_w.shape
    L, embed_dim = emb_w.shape
    F = D - embed_dim
    assert O % 128 == 0, "output_dim must be a multiple of 128 for lane-aligned slices"

    # Gating: fold the embedding into the label rows and fuse the K halves:
    #   label_embeds @ Wg_l == labels @ (emb_w @ Wg_l)
    wg = jnp.concatenate([gate_w[:F, :], emb_w @ gate_w[F:, :]], axis=0)       # (F+L, E)

    # Experts: stack into one lane-dense (D, E*O) weight with E-major / O-minor
    # ordering (column block e*O:(e+1)*O == expert e, matching exp_b rows),
    # then fold the embedding and fuse the K halves.
    we_full = jnp.transpose(exp_w, (1, 0, 2)).reshape(D, E * O)                # (D, E*O)
    we = jnp.concatenate([we_full[:F, :], emb_w @ we_full[F:, :]], axis=0)     # (F+L, E*O)

    # Flattened expert biases in the same E-major / O-minor order.
    be_flat = exp_b.reshape(1, E * O)

    return (wg.astype(compute_dtype),
            gate_b.astype(jnp.float32).reshape(1, E),
            we.astype(compute_dtype),
            be_flat.astype(jnp.float32),
            E, O)


def _xla_forward(features, labels, prepared):
    """Fused XLA path for tiny batches (single-step grid would only add overhead)."""
    wg, bg, we, be_flat, E, O = prepared
    combined = jnp.concatenate([features, labels], axis=-1).astype(wg.dtype)
    gate = jax.nn.sigmoid(
        jnp.dot(combined, wg, preferred_element_type=jnp.float32) + bg)        # (B, E)
    expert_flat = (jnp.dot(combined, we, preferred_element_type=jnp.float32)
                   + be_flat)                                                  # (B, E*O)
    expert = expert_flat.reshape(features.shape[0], E, O)
    return jnp.einsum('be,beo->bo', gate, expert)


def moe_forward(features, labels, prepared, *, batch_tile=1024,
                out_dtype=jnp.float32, force_pallas=False):
    wg, bg, we, be_flat, E, O = prepared
    B, F = features.shape
    L = labels.shape[1]
    EO = we.shape[1]
    assert wg.shape == (F + L, E)
    assert we.shape[0] == F + L and EO == E * O
    assert be_flat.shape == (1, EO)
    assert O % 128 == 0

    features = features.astype(jnp.float32)
    labels = labels.astype(jnp.float32)

    # Batch tiling: multiple of 8 sublanes; default 1024 rows amortizes the
    # ~0.35 us per-grid-step overhead while staying far under scoped VMEM.
    Bp8 = _round_up(max(B, 8), 8)
    tile_b = _round_up(min(batch_tile, Bp8), 8)
    Bp = _round_up(Bp8, tile_b)
    grid_steps = Bp // tile_b

    if grid_steps <= 1 and not force_pallas:
        # Single-step grid => no pipelining, no dual-TC split; fused XLA wins.
        return _xla_forward(features, labels, prepared).astype(out_dtype)

    if Bp != B:
        pad = Bp - B
        features = jnp.pad(features, ((0, pad), (0, 0)))
        labels = jnp.pad(labels, ((0, pad), (0, 0)))

    # Activations tiled on the batch axis; all weights resident (block 0 always).
    in_specs = [
        pl.BlockSpec((tile_b, F), lambda i: (i, 0)),       # features
        pl.BlockSpec((tile_b, L), lambda i: (i, 0)),       # labels
        pl.BlockSpec((F + L, E), lambda i: (0, 0)),        # fused gating weight
        pl.BlockSpec((1, E), lambda i: (0, 0)),            # gating bias
        pl.BlockSpec((F + L, EO), lambda i: (0, 0)),       # fused expert weights
        pl.BlockSpec((1, EO), lambda i: (0, 0)),           # flattened expert biases
    ]
    out_spec = pl.BlockSpec((tile_b, O), lambda i: (i, 0))

    # Rough per-step VMEM estimate (double-buffered I/O + f32 intermediates +
    # resident weights); only raise the scoped limit if a sweep needs it.
    wbytes = jnp.dtype(wg.dtype).itemsize
    vmem_est = (2 * tile_b * (F + L + O) * 4
                + tile_b * (EO + O + E) * 4
                + 2 * (wg.size + we.size) * wbytes)
    cp_kwargs = dict(dimension_semantics=("parallel",))
    if vmem_est > 12 * 1024 * 1024:
        cp_kwargs["vmem_limit_bytes"] = min(int(2 * vmem_est), 64 * 1024 * 1024)

    out = pl.pallas_call(
        functools.partial(moe_kernel, num_experts=E, output_dim=O),
        out_shape=jax.ShapeDtypeStruct((Bp, O), out_dtype),
        grid=(grid_steps,),
        in_specs=in_specs,
        out_specs=out_spec,
        compiler_params=pltpu.CompilerParams(**cp_kwargs),
    )(features, labels, wg, bg, we, be_flat)

    return out[:B] if Bp != B else out


def reference_forward(features, labels, params):
    """Pure-JAX reference matching the original PyTorch module exactly."""
    emb_w, gate_w, gate_b, exp_w, exp_b = params
    label_embeds = labels @ emb_w
    combined = jnp.concatenate([features, label_embeds], axis=-1)
    gate = jax.nn.sigmoid(combined @ gate_w + gate_b)                      # (B, E)
    expert_outputs = jnp.einsum('bd,edo->beo', combined, exp_w) + exp_b[None]
    return jnp.einsum('be,beo->bo', gate, expert_outputs)


if __name__ == "__main__":
    # Small shapes consistent with the module's forward.
    B = 512
    feature_dim = 32
    label_dim = 16
    embed_dim = 32
    num_experts = 4
    output_dim = 128
    D = feature_dim + embed_dim

    key = jax.random.PRNGKey(0)
    k_feat, k_lab, k_emb, k_gw, k_gb, k_ew, k_eb = jax.random.split(key, 7)

    features = jax.random.normal(k_feat, (B, feature_dim), dtype=jnp.float32)
    labels = jax.random.bernoulli(k_lab, 0.3, (B, label_dim)).astype(jnp.float32)

    # Parameters match the PyTorch module (weights transposed so forward is A @ W).
    emb_w = jax.random.normal(k_emb, (label_dim, embed_dim), dtype=jnp.float32) * 0.1
    gate_w = jax.random.normal(k_gw, (D, num_experts), dtype=jnp.float32) * 0.1
    gate_b = jax.random.normal(k_gb, (1, num_experts), dtype=jnp.float32) * 0.1
    exp_w = jax.random.normal(k_ew, (num_experts, D, output_dim), dtype=jnp.float32) * 0.1
    exp_b = jax.random.normal(k_eb, (num_experts, output_dim), dtype=jnp.float32) * 0.1

    params = (emb_w, gate_w, gate_b, exp_w, exp_b)
    ref = reference_forward(features, labels, params)

    # Default path: bf16 MXU operands, f32 accumulation; grid of 4 batch tiles.
    prepared_bf16 = prepare_params(*params)
    out_bf16 = moe_forward(features, labels, prepared_bf16, batch_tile=128)
    jax.block_until_ready(out_bf16)
    assert out_bf16.shape == (B, output_dim)
    assert jnp.allclose(out_bf16, ref, atol=5e-2, rtol=5e-2), "bf16 kernel mismatch vs reference"

    # f32-operand path: tight tolerance.
    prepared_f32 = prepare_params(*params, compute_dtype=jnp.float32)
    out_f32 = moe_forward(features, labels, prepared_f32, batch_tile=128)
    jax.block_until_ready(out_f32)
    assert jnp.allclose(out_f32, ref, atol=2e-4, rtol=2e-4), "f32 kernel mismatch vs reference"

    # Ragged batch (padding path), forced through the Pallas kernel.
    out_rag = moe_forward(features[:509], labels[:509], prepared_f32,
                          batch_tile=128, force_pallas=True)
    jax.block_until_ready(out_rag)
    assert jnp.allclose(out_rag, ref[:509], atol=2e-4, rtol=2e-4), "padded-batch mismatch"

    # Tiny-batch path dispatches to the fused XLA fallback.
    out_small = moe_forward(features[:8], labels[:8], prepared_f32)
    jax.block_until_ready(out_small)
    assert jnp.allclose(out_small, ref[:8], atol=2e-4, rtol=2e-4), "small-batch fallback mismatch"

    print("KERNEL_OK")
</pallas_src>

<mosaic_0001>
module attributes {stable_mosaic.version = 11 : i64} {
  func.func @moe_kernel(%arg0: i32, %arg1: memref<128x32xf32, #tpu.memory_space<vmem>>, %arg2: memref<128x16xf32, #tpu.memory_space<vmem>>, %arg3: memref<48x4xbf16, #tpu.memory_space<vmem>>, %arg4: memref<1x4xf32, #tpu.memory_space<vmem>>, %arg5: memref<48x512xbf16, #tpu.memory_space<vmem>>, %arg6: memref<1x512xf32, #tpu.memory_space<vmem>>, %arg7: memref<128x128xf32, #tpu.memory_space<vmem>>) attributes {dimension_semantics = [#tpu.dimension_semantics<parallel>], iteration_bounds = array<i64: 4>, scalar_prefetch = 0 : i64, scratch_operands = 0 : i64, tpu.core_type = #tpu.core_type<tc>, window_params = [{transform_indices = @transform_0, window_bounds = array<i64: 128, 32>}, {transform_indices = @transform_1, window_bounds = array<i64: 128, 16>}, {pipeline_mode = #tpu.pipeline_mode<synchronous>, transform_indices = @transform_2, window_bounds = array<i64: 48, 4>}, {pipeline_mode = #tpu.pipeline_mode<synchronous>, transform_indices = @transform_3, window_bounds = array<i64: 1, 4>}, {pipeline_mode = #tpu.pipeline_mode<synchronous>, transform_indices = @transform_4, window_bounds = array<i64: 48, 512>}, {pipeline_mode = #tpu.pipeline_mode<synchronous>, transform_indices = @transform_5, window_bounds = array<i64: 1, 512>}, {transform_indices = @transform_6, window_bounds = array<i64: 128, 128>}]} {
    %c0 = arith.constant 0 : index
    %c0_0 = arith.constant 0 : index
    %0 = vector.load %arg1[%c0, %c0_0] : memref<128x32xf32, #tpu.memory_space<vmem>>, vector<128x32xf32>
    %c0_1 = arith.constant 0 : index
    %c0_2 = arith.constant 0 : index
    %1 = vector.load %arg2[%c0_1, %c0_2] : memref<128x16xf32, #tpu.memory_space<vmem>>, vector<128x16xf32>
    %2 = tpu.concatenate %0, %1 in 1 : vector<128x32xf32>, vector<128x16xf32> -> vector<128x48xf32>
    %3 = arith.truncf %2 : vector<128x48xf32> to vector<128x48xbf16>
    %c0_3 = arith.constant 0 : index
    %c0_4 = arith.constant 0 : index
    %4 = vector.load %arg3[%c0_3, %c0_4] : memref<48x4xbf16, #tpu.memory_space<vmem>>, vector<48x4xbf16>
    %cst = arith.constant dense<0.000000e+00> : vector<128x4xf32>
    %5 = tpu.matmul %3, %4, %cst {dimension_numbers = #tpu.dot_dimension_numbers<[1], [0], [0], [1], [0, 0, 1, 1], [], []>} : vector<128x48xbf16>, vector<48x4xbf16>, vector<128x4xf32> -> vector<128x4xf32>
    %c0_5 = arith.constant 0 : index
    %c0_6 = arith.constant 0 : index
    %6 = vector.load %arg4[%c0_5, %c0_6] : memref<1x4xf32, #tpu.memory_space<vmem>>, vector<1x4xf32>
    %7 = vector.broadcast %6 : vector<1x4xf32> to vector<128x4xf32>
    %8 = arith.addf %5, %7 : vector<128x4xf32>
    %9 = arith.negf %8 : vector<128x4xf32>
    %10 = math.exp %9 : vector<128x4xf32>
    %cst_7 = arith.constant 1.000000e+00 : f32
    %11 = vector.broadcast %cst_7 : f32 to vector<128x4xf32>
    %12 = arith.addf %11, %10 : vector<128x4xf32>
    %13 = arith.divf %11, %12 : vector<128x4xf32>
    %c0_8 = arith.constant 0 : index
    %c0_9 = arith.constant 0 : index
    %14 = vector.load %arg5[%c0_8, %c0_9] : memref<48x512xbf16, #tpu.memory_space<vmem>>, vector<48x512xbf16>
    %cst_10 = arith.constant dense<0.000000e+00> : vector<128x512xf32>
    %15 = tpu.matmul %3, %14, %cst_10 {dimension_numbers = #tpu.dot_dimension_numbers<[1], [0], [0], [1], [0, 0, 1, 1], [], []>} : vector<128x48xbf16>, vector<48x512xbf16>, vector<128x512xf32> -> vector<128x512xf32>
    %c0_11 = arith.constant 0 : index
    %c0_12 = arith.constant 0 : index
    %16 = vector.load %arg6[%c0_11, %c0_12] : memref<1x512xf32, #tpu.memory_space<vmem>>, vector<1x512xf32>
    %17 = vector.broadcast %16 : vector<1x512xf32> to vector<128x512xf32>
    %18 = arith.addf %15, %17 : vector<128x512xf32>
    %19 = vector.extract_strided_slice %13 {offsets = [0, 0], sizes = [128, 1], strides = [1, 1]} : vector<128x4xf32> to vector<128x1xf32>
    %20 = vector.extract_strided_slice %18 {offsets = [0, 0], sizes = [128, 128], strides = [1, 1]} : vector<128x512xf32> to vector<128x128xf32>
    %21 = vector.broadcast %19 : vector<128x1xf32> to vector<128x128xf32>
    %22 = arith.mulf %21, %20 : vector<128x128xf32>
    %23 = vector.extract_strided_slice %13 {offsets = [0, 1], sizes = [128, 1], strides = [1, 1]} : vector<128x4xf32> to vector<128x1xf32>
    %24 = vector.extract_strided_slice %18 {offsets = [0, 128], sizes = [128, 128], strides = [1, 1]} : vector<128x512xf32> to vector<128x128xf32>
    %25 = vector.broadcast %23 : vector<128x1xf32> to vector<128x128xf32>
    %26 = arith.mulf %25, %24 : vector<128x128xf32>
    %27 = arith.addf %22, %26 : vector<128x128xf32>
    %28 = vector.extract_strided_slice %13 {offsets = [0, 2], sizes = [128, 1], strides = [1, 1]} : vector<128x4xf32> to vector<128x1xf32>
    %29 = vector.extract_strided_slice %18 {offsets = [0, 256], sizes = [128, 128], strides = [1, 1]} : vector<128x512xf32> to vector<128x128xf32>
    %30 = vector.broadcast %28 : vector<128x1xf32> to vector<128x128xf32>
    %31 = arith.mulf %30, %29 : vector<128x128xf32>
    %32 = arith.addf %27, %31 : vector<128x128xf32>
    %33 = vector.extract_strided_slice %13 {offsets = [0, 3], sizes = [128, 1], strides = [1, 1]} : vector<128x4xf32> to vector<128x1xf32>
    %34 = vector.extract_strided_slice %18 {offsets = [0, 384], sizes = [128, 128], strides = [1, 1]} : vector<128x512xf32> to vector<128x128xf32>
    %35 = vector.broadcast %33 : vector<128x1xf32> to vector<128x128xf32>
    %36 = arith.mulf %35, %34 : vector<128x128xf32>
    %37 = arith.addf %32, %36 : vector<128x128xf32>
    %c0_13 = arith.constant 0 : index
    %c0_14 = arith.constant 0 : index
    %38 = vector.load %arg7[%c0_13, %c0_14] : memref<128x128xf32, #tpu.memory_space<vmem>>, vector<128x128xf32>
    tpu.vector_store %arg7[%c0_13, %c0_14], %37 {strides = array<i32>} : memref<128x128xf32, #tpu.memory_space<vmem>>, vector<128x128xf32>,
    return
  }
  func.func @transform_0(%arg0: i32) -> (i32, i32) {
    %c0_i32 = arith.constant 0 : i32
    %c0_i32_0 = arith.constant 0 : i32
    return %arg0, %c0_i32 : i32, i32
  }
  func.func @transform_1(%arg0: i32) -> (i32, i32) {
    %c0_i32 = arith.constant 0 : i32
    %c0_i32_0 = arith.constant 0 : i32
    return %arg0, %c0_i32 : i32, i32
  }
  func.func @transform_2(%arg0: i32) -> (i32, i32) {
    %c0_i32 = arith.constant 0 : i32
    %c0_i32_0 = arith.constant 0 : i32
    %c0_i32_1 = arith.constant 0 : i32
    return %c0_i32, %c0_i32_0 : i32, i32
  }
  func.func @transform_3(%arg0: i32) -> (i32, i32) {
    %c0_i32 = arith.constant 0 : i32
    %c0_i32_0 = arith.constant 0 : i32
    %c0_i32_1 = arith.constant 0 : i32
    return %c0_i32, %c0_i32_0 : i32, i32
  }
  func.func @transform_4(%arg0: i32) -> (i32, i32) {
    %c0_i32 = arith.constant 0 : i32
    %c0_i32_0 = arith.constant 0 : i32
    %c0_i32_1 = arith.constant 0 : i32
    return %c0_i32, %c0_i32_0 : i32, i32
  }
  func.func @transform_5(%arg0: i32) -> (i32, i32) {
    %c0_i32 = arith.constant 0 : i32
    %c0_i32_0 = arith.constant 0 : i32
    %c0_i32_1 = arith.constant 0 : i32
    return %c0_i32, %c0_i32_0 : i32, i32
  }
  func.func @transform_6(%arg0: i32) -> (i32, i32) {
    %c0_i32 = arith.constant 0 : i32
    %c0_i32_0 = arith.constant 0 : i32
    return %arg0, %c0_i32 : i32, i32
  }
}

</mosaic_0001>

<bundles_post_ra>
// kernel: tpu_custom_call.1
= control target key start
LH: loop header
LB: loop body
LE: loop exit
PB: predicated region body
PF: predicated region fallthrough
CT: control target
= control target key end

     0   :  { %11 = vsyncpa [#allocation3], 0  ;;  %s2574_s0 = inlined_call_operand.vmem [shape: f32[512,32], index: 0, kind: input, shape index: {}]   ;;  %s2575_s1 = inlined_call_operand.vmem [shape: f32[512,16], index: 1, kind: input, shape index: {}]   ;;  %s2576_s2 = inlined_call_operand.vmem [shape: bf16[48,4], index: 2, kind: input, shape index: {}]   ;;  %s2577_s3 = inlined_call_operand.vmem [shape: f32[1,4], index: 3, kind: input, shape index: {}]   ;;  %s2578_s4 = inlined_call_operand.vmem [shape: bf16[48,512], index: 4, kind: input, shape index: {}]   ;;  %s2579_s5 = inlined_call_operand.vmem [shape: f32[1,512], index: 5, kind: input, shape index: {}]   ;;  %s2580_s6 = inlined_call_operand.hbm [shape: f32[512,128], index: 6, kind: output, shape index: {}]  }
   0x1   :  { %13 = vsyncpa [#allocation3 + $0x1], 0  ;;  %s1885_s21 = smov 0   ;;  %s1887_s22 = smov 0  }
   0x2   :  { %s1889_s23 = smov 0   ;;  %s1891_s24 = smov 0  }
   0x3 LB: > { %s1906_s25 = sadd.s32 4294967295, %s1840_s24   ;;  %s1454_s26 = sadd.s32 4294967294, %s1840_s24   ;;  %s1840_s24 = sphi %s1891_s24, %s2648_s24   ;;  %s1836_s23 = sphi %s1889_s23, %s2647_s23   ;;  %s1832_s22 = sphi %s1887_s22, %s2646_s22   ;;  %s1828_s21 = sphi %s1885_s21, %s2645_s21  }
   0x4   : > { %s1910_s27 = sadd.s32 1, %s1840_s24   ;;  %s162_s28 = sadd.s32 1, %s1836_s23 }
   0x5   : > { %s159_s29 = ssub.s32 %s1840_s24, %s1910_s27  ;;  %p172_p0 = scmp.ne.s32.totalorder %s1836_s23, %s1832_s22 }
   0x6   : > { %p160_p1 = scmp.eq.s32.totalorder %s159_s29, 0  ;;  %p173_p2 = scmp.eq.s32.totalorder %s1906_s25, 3 }
   0x7   : > { %p178_p3 = scmp.ne.s32.totalorder %s1832_s22, %s1828_s21  ;;  %p179_p4 = scmp.eq.s32.totalorder %s1454_s26, 3 }
   0x8   : > { %s1921_s30 = scalar_select %p160_p1, %s1836_s23, %s162_s28  }
   0x9   : > { %p1923_p5 = por %p173_p2, %p172_p0  ;;  %p1927_p6 = por %p179_p4, %p178_p3 }
   0xa   : > { %p1457_p7 = scmp.ge.s32.totalorder %s1840_s24, 1  ;;  %p227_p8 = scmp.lt.s32.totalorder %s1840_s24, 5 }
   0xc   : > { %p228_p9 = pnand %p1457_p7, %p227_p8 }
   0xe   : > { %231 = sbr.rel (%p228_p9) target bundleno = 691 (0x2b3), region = 44 }
  0x15   : > { %s1459_s9 = sshll.u32 %s1906_s25, 4  ;;  %v1693_v0 = vld [vmem:[%s2576_s2] sm:$0xff]   ;;  %v1694_v1 = vld [vmem:[%s2576_s2 + $0x8] sm:$0xff]   ;;  %v1695_v2 = vld [vmem:[%s2576_s2 + $0x10] sm:$0xff]   ;;  %s1842_s20 = smov 32   ;;  %v2583_v25 = vmov 0  }
  0x16   : > { %p263_p10 = scmp.lt.s32.totalorder %s1459_s9, 63  ;;  %1536 = vmatprep.subr.bf16.mxu0 %v1693_v0  ;;  %1558 = vmatprep.subr.bf16.mxu1 %v1693_v0  ;;  %v1698_v27 = vld [vmem:[%s2578_s4 + $0xc] ss:$16 sps:$4 sm:$0xff]   ;;  %v1701_v28 = vld [vmem:[%s2578_s4 + $0x4] ss:$16 sps:$4 sm:$0xff]   ;;  %vm372_vm0 = vcmask 261120  }
  0x17   : > { %1537 = vmatpush3.bf16.msra.mxu0 %v1693_v0  ;;  %1561 = vmatpush3.bf16.msra.mxu1 %v1693_v0  ;;  %vm428_vm1 = vcmask 392192   ;;  %v1696_v48 = vld [vmem:[%s2578_s4 + $0x8] ss:$16 sps:$4 sm:$0xff]   ;;  %v1704_v55 = vld [vmem:[%s2578_s4 + $0x2c] ss:$16 sps:$4 sm:$0xff]   ;;  %s259_s28 = sand.u32 1, %s1832_s22  }
  0x18   : > { %s2650_s9 = smov (!%p263_p10, %s1459_s9), 63  ;;  %1538 = vmatprep.subr.bf16.mxu0 %v1694_v1  ;;  %1559 = vmatprep.subr.bf16.mxu1 %v1694_v1  ;;  %s1458_s29 = sshll.u32 %s259_s28, 7 }
  0x19   : > { %s1460_s16 = sshll.u32 %s2650_s9, 3  ;;  %1650 = vset.pattern.permute.xlu1 %v2583_v25  ;;  %s2423_s10 = scalar_lea.vmem [#allocation2], %s1458_s29 }
  0x1a   : > { %s1951_s19 = scalar_lea.vmem %s2575_s1, %s1460_s16  ;;  %s1981_s13 = scalar_lea.vmem %s2574_s0, %s1460_s16 }
  0x1b   : > { %v292_v3 = vld [vmem:[%s1951_s19] sm:$0xff]  ;;  %v293_v4 = vld [vmem:[%s1951_s19 + $0x8] sm:$0xff]  ;;  %v294_v5 = vld [vmem:[%s1951_s19 + $0x10] sm:$0xff]  ;;  %1539 = vmatpush3.bf16.msra.mxu0 %v1694_v1  ;;  %1562 = vmatpush3.bf16.msra.mxu1 %v1694_v1  ;;  %s1524_s11 = sshll.u32 %s1906_s25, 11  ;;  %s1380_s12 = sshll.u32 %s2423_s10, 4  ;;  %s2528_s12 = int_to_ptr.vmem [resolvable:$true] %s1380_s12 }
  0x1c   : > { %v1610_v6 = vpack.i.bf16 %v293_v4, %v292_v3  ;;  %v295_v7 = vld [vmem:[%s1951_s19 + $0x18] sm:$0xff]  ;;  %v300_v8 = vld [vmem:[%s1951_s19 + $0x40] sm:$0xff]  ;;  %v301_v9 = vld [vmem:[%s1951_s19 + $0x48] sm:$0xff]  ;;  %1540 = vmatprep.subr.bf16.mxu0 %v1695_v2  ;;  %1560 = vmatprep.subr.bf16.mxu1 %v1695_v2  ;;  %s2526_s15 = scalar_lea.hbm %s2580_s6, %s1524_s11  ;;  %s2533_s16 = scalar_lea.sflag [#allocation3], %s259_s28 }
  0x1d   : > { %v1620_v10 = vpack.i.bf16 %v295_v7, %v294_v5  ;;  %v302_v11 = vld [vmem:[%s1951_s19 + $0x50] sm:$0xff]  ;;  %v303_v12 = vld [vmem:[%s1951_s19 + $0x58] sm:$0xff]  ;;  %v1615_v13 = vpack.i.bf16 %v301_v9, %v300_v8  ;;  %v296_v15 = vld [vmem:[%s1951_s19 + $0x20] sm:$0xff]  ;;  %s1778_s25 = scalar_lea.vmem %s2528_s12, 2048 }
  0x1e   : > { %1611 = vrot.lane.b32.xlu0 %v1610_v6, %s1842_s20  ;;  %v1625_v14 = vpack.i.bf16 %v303_v12, %v302_v11  ;;  %v297_v16 = vld [vmem:[%s1951_s19 + $0x28] sm:$0xff]  ;;  %v304_v17 = vld [vmem:[%s1951_s19 + $0x60] sm:$0xff]  ;;  %v298_v21 = vld [vmem:[%s1951_s19 + $0x30] sm:$0xff]  ;;  %p1779_p11 = scmp.ne.s32.totalorder %s2528_s12, %s1778_s25 }
  0x1f   : > { %1621 = vrot.lane.b32.xlu1 %v1620_v10, %s1842_s20  ;;  %v305_v18 = vld [vmem:[%s1951_s19 + $0x68] sm:$0xff]  ;;  %1541 = vmatpush3.bf16.msra.mxu0 %v1695_v2  ;;  %v1630_v19 = vpack.i.bf16 %v297_v16, %v296_v15  ;;  %v299_v22 = vld [vmem:[%s1951_s19 + $0x38] sm:$0xff]  ;;  %v306_v23 = vld [vmem:[%s1951_s19 + $0x70] sm:$0xff] }
  0x20   : > { %1563 = vmatpush3.bf16.msra.mxu1 %v1695_v2  ;;  %v1635_v20 = vpack.i.bf16 %v305_v18, %v304_v17  ;;  %v307_v24 = vld [vmem:[%s1951_s19 + $0x78] sm:$0xff]  ;;  %v1640_v26 = vpack.i.bf16 %v299_v22, %v298_v21  ;;  %853 = vmatprep.subr.bf16.mxu0 %v1698_v27  ;;  %v276_v31 = vld [vmem:[%s1981_s13] sm:$0xff]  ;;  %v277_v32 = vld [vmem:[%s1981_s13 + $0x8] sm:$0xff]  ;;  %p1780_p12 = pnand %p1779_p11, %p1923_p5 }
  0x21   : > { %v1645_v29 = vpack.i.bf16 %v307_v24, %v306_v23  ;;  %740 = vmatprep.subr.bf16.mxu1 %v1701_v28  ;;  %v278_v36 = vld [vmem:[%s1981_s13 + $0x10] sm:$0xff]  ;;  %v279_v37 = vld [vmem:[%s1981_s13 + $0x18] sm:$0xff]  ;;  %v284_v46 = vld [vmem:[%s1981_s13 + $0x40] sm:$0xff] }
  0x22   : > { %1616 = vrot.lane.b32.xlu0 %v1615_v13, %s1842_s20  ;;  %v285_v47 = vld [vmem:[%s1981_s13 + $0x48] sm:$0xff]  ;;  %v286_v53 = vld [vmem:[%s1981_s13 + $0x50] sm:$0xff]  ;;  %v287_v54 = vld [vmem:[%s1981_s13 + $0x58] sm:$0xff]  ;;  %p1781_p13 = pneg %p1780_p12 }
  0x23   : > { %1626 = vrot.lane.b32.xlu1 %v1625_v14, %s1842_s20  ;;  %v280_v58 = vld [vmem:[%s1981_s13 + $0x20] sm:$0xff]  ;;  %v281_v59 = vld [vmem:[%s1981_s13 + $0x28] sm:$0xff]  ;;  %v282_v16 = vld [vmem:[%s1981_s13 + $0x30] sm:$0xff] }
  0x24   : > { %v288_v1 = vld [vmem:[%s1981_s13 + $0x60] sm:$0xff]  ;;  %v1702_v4 = vld [vmem:[%s2578_s4 + $0x28] ss:$16 sps:$4 sm:$0xff]   ;;  %v1710_v11 = vld [vmem:[%s2578_s4 + $0x4c] ss:$16 sps:$4 sm:$0xff]  }
  0x25   : > { %v1699_v3 = vld [vmem:[%s2578_s4] ss:$16 sps:$4 sm:$0xff]   ;;  %v289_v9 = vld [vmem:[%s1981_s13 + $0x68] sm:$0xff]  ;;  %v1707_v10 = vld [vmem:[%s2578_s4 + $0x24] ss:$16 sps:$4 sm:$0xff]  }
  0x26   : > { %1631 = vrot.lane.b32.xlu0 %v1630_v19, %s1842_s20  ;;  %v283_v21 = vld [vmem:[%s1981_s13 + $0x38] sm:$0xff]  ;;  %v1705_v22 = vld [vmem:[%s2578_s4 + $0x20] ss:$16 sps:$4 sm:$0xff]  }
  0x27   : > { %1636 = vrot.lane.b32.xlu1 %v1635_v20, %s1842_s20  ;;  %v1708_v23 = vld [vmem:[%s2578_s4 + $0x48] ss:$16 sps:$4 sm:$0xff]  }
  0x2a   : > { %1641 = vrot.lane.b32.xlu0 %v1640_v26, %s1842_s20 }
  0x2b   : > { %1646 = vrot.lane.b32.xlu1 %v1645_v29, %s1842_s20  ;;  %v290_v29 = vld [vmem:[%s1981_s13 + $0x70] sm:$0xff] }
  0x90   : > { %v1612_v30 = vpop.permute.xlu0 %1611 }
  0x91   : > { %v1614_v33 = vunpack.i.h.bf16 %v1612_v30  ;;  %v1613_v34 = vunpack.i.l.bf16 %v1612_v30  ;;  %v1622_v35 = vpop.permute.xlu1 %1621  ;;  %v291_v30 = vld [vmem:[%s1981_s13 + $0x78] sm:$0xff]  ;;  %s1847_s13 = smov [#allocation2]  }
  0x92   : > { %v1624_v38 = vunpack.i.h.bf16 %v1622_v35  ;;  %v1623_v39 = vunpack.i.l.bf16 %v1622_v35  ;;  %s1782_s17 = sshll.u32 %s1847_s13, 4  ;;  %s1783_s17 = int_to_ptr.vmem [resolvable:$false] %s1782_s17 }
  0x93   : > { %v373_v40 = vsel %vm372_vm0, %v276_v31, %v1613_v34  ;;  %v374_v41 = vsel %vm372_vm0, %v277_v32, %v1614_v33  ;;  %v1713_v31 = vld [vmem:[%s2578_s4 + $0x44] ss:$16 sps:$4 sm:$0xff]   ;;  %s1784_s18 = scalar_lea.vmem %s1783_s17, 4096  ;;  %p1785_p0 = scmp.lt.s32.totalorder %s2528_s12, %s1783_s17 }
  0x94   : > { %v375_v42 = vsel %vm372_vm0, %v278_v36, %v1623_v39  ;;  %v376_v43 = vsel %vm372_vm0, %v279_v37, %v1624_v38  ;;  %v1617_v44 = vpop.permute.xlu0 %1616  ;;  %v1991_v45 = vpack.c.bf16 %v374_v41, %v373_v40  ;;  %v1711_v39 = vld [vmem:[%s2578_s4 + $0x40] ss:$16 sps:$4 sm:$0xff]   ;;  %v2587_v41 = vmov 1   ;;  %p1786_p1 = scmp.lt.s32.totalorder %s1784_s18, %s1778_s25 }
  0x95   : > { %v1998_v49 = vpack.c.bf16 %v376_v43, %v375_v42  ;;  %v1619_v50 = vunpack.i.h.bf16 %v1617_v44  ;;  %v1618_v51 = vunpack.i.l.bf16 %v1617_v44  ;;  %v1627_v52 = vpop.permute.xlu1 %1626  ;;  %1652 = vset.pattern.permute.xlu0 %v2587_v41  ;;  %v2109_v42 = vld [vmem:[%s2577_s3] ss:$0 sm:$0xff] }
  0x96   : > { %v1629_v56 = vunpack.i.h.bf16 %v1627_v52  ;;  %v1628_v57 = vunpack.i.l.bf16 %v1627_v52  ;;  %1542 = vmatprep.mubr.msk.bf16.mxu0 %vm428_vm1, %v1991_v45  ;;  %p1787_p2 = por %p1786_p1, %p1785_p0 }
  0x97   : > { %1543 = vmatmul.mubr.msk.bf16.vlgmr.msra.gmra.mrb[0].mxu0 %vm428_vm1, %v1998_v49  ;;  %v381_v60 = vsel %vm372_vm0, %v284_v46, %v1618_v51  ;;  %v382_v61 = vsel %vm372_vm0, %v285_v47, %v1619_v50 }
  0x98   : > { %v383_v62 = vsel %vm372_vm0, %v286_v53, %v1628_v57  ;;  %v384_v63 = vsel %vm372_vm0, %v287_v54, %v1629_v56  ;;  %v1632_v0 = vpop.permute.xlu0 %1631  ;;  %v2016_v2 = vpack.c.bf16 %v382_v61, %v381_v60  ;;  %854 = vmatpush1.bf16.msra.mxu0 %v1696_v48  ;;  %p1788_p3 = pnand %p1787_p2, %p1781_p13 }
  0x99   : > { %v2024_v5 = vpack.c.bf16 %v384_v63, %v383_v62  ;;  %v1634_v6 = vunpack.i.h.bf16 %v1632_v0  ;;  %v1633_v7 = vunpack.i.l.bf16 %v1632_v0  ;;  %v1637_v8 = vpop.permute.xlu1 %1636  ;;  %855 = vmatprep.subr.bf16.mxu0 %v1704_v55 }
  0x9a   : > { %v1639_v12 = vunpack.i.h.bf16 %v1637_v8  ;;  %v1638_v13 = vunpack.i.l.bf16 %v1637_v8  ;;  %1550 = vmatprep.mubr.msk.bf16.mxu1 %vm428_vm1, %v2016_v2 }
  0x9b   : > { %v377_v14 = vsel %vm372_vm0, %v280_v58, %v1633_v7  ;;  %v378_v15 = vsel %vm372_vm0, %v281_v59, %v1634_v6  ;;  %1551 = vmatmul.mubr.msk.bf16.vlgmr.msra.gmra.mrb[0].mxu1 %vm428_vm1, %v2024_v5 }
  0x9c   : > { %v391_v17 = vpack.c.bf16 %v378_v15, %v377_v14  ;;  %v385_v18 = vsel %vm372_vm0, %v288_v1, %v1638_v13  ;;  %v386_v19 = vsel %vm372_vm0, %v289_v9, %v1639_v12  ;;  %v1642_v20 = vpop.permute.xlu0 %1641  ;;  %741 = vmatpush1.bf16.msra.mxu1 %v1699_v3  ;;  %856 = vmatpush1.bf16.msra.mxu0 %v1702_v4 }
  0x9d   : > { %v395_v24 = vpack.c.bf16 %v386_v19, %v385_v18  ;;  %v1644_v26 = vunpack.i.h.bf16 %v1642_v20  ;;  %v1643_v27 = vunpack.i.l.bf16 %v1642_v20  ;;  %v1647_v28 = vpop.permute.xlu1 %1646  ;;  %742 = vmatprep.subr.bf16.mxu1 %v1707_v10  ;;  %857 = vmatprep.subr.bf16.mxu0 %v1710_v11  ;;  %v660_v20 = vlaneseq }
  0x9e   : > { %v1649_v32 = vunpack.i.h.bf16 %v1647_v28  ;;  %v1648_v33 = vunpack.i.l.bf16 %v1647_v28  ;;  %1546 = vmatprep.mubr.msk.bf16.mxu0 %vm428_vm1, %v391_v17 }
  0x9f   : > { %v379_v34 = vsel %vm372_vm0, %v282_v16, %v1643_v27  ;;  %v380_v35 = vsel %vm372_vm0, %v283_v21, %v1644_v26  ;;  %1554 = vmatprep.mubr.msk.bf16.mxu1 %vm428_vm1, %v395_v24  ;;  %v661_v26 = vshrl.u32 %v660_v20, 7 }
  0xa0   : > { %v392_v36 = vpack.c.bf16 %v380_v35, %v379_v34  ;;  %v387_v37 = vsel %vm372_vm0, %v290_v29, %v1648_v33  ;;  %v388_v38 = vsel %vm372_vm0, %v291_v30, %v1649_v32  ;;  %743 = vmatpush1.bf16.msra.mxu1 %v1705_v22  ;;  %858 = vmatpush1.bf16.msra.mxu0 %v1708_v23 }
  0xa1   : > { %v396_v40 = vpack.c.bf16 %v388_v38, %v387_v37  ;;  %744 = vmatprep.subr.bf16.mxu1 %v1713_v31  ;;  %v670_v37 = vsub.s32 2, %v661_v26 }
  0xa2   : > { %1547 = vmatmul.mubr.msk.bf16.gmra.mrb[4].mxu0 %vm428_vm1, %v392_v36 }
  0xa3   : > { %1555 = vmatmul.mubr.msk.bf16.gmra.mrb[4].mxu1 %vm428_vm1, %v396_v40  ;;  %885 = vmatprep.mubr.bf16.mxu0 %v2583_v25 }
  0xa4   : > { %745 = vmatpush1.bf16.msra.mxu1 %v1711_v39  ;;  %772 = vmatprep.mubr.bf16.mxu1 %v2583_v25 }
  0xaa   : > { %1511 = vmatmul.mubr.msk.bf16.vlgmr.msra.gmra.mrb[8].mxu0 %vm428_vm1, %v1991_v45 }
  0xab   : > { %1503 = vmatmul.mubr.msk.bf16.vlgmr.msra.gmra.mrb[8].mxu1 %vm428_vm1, %v1991_v45  ;;  %895 = vmatprep.mubr.bf16.mxu0 %v2583_v25 }
  0xac   : > { %782 = vmatprep.mubr.bf16.mxu1 %v2583_v25 }
  0xb2   : > { %1512 = vmatmul.mubr.msk.bf16.gmra.mrb[12].mxu0 %vm428_vm1, %v1998_v49 }
  0xb3   : > { %1504 = vmatmul.mubr.msk.bf16.gmra.mrb[12].mxu1 %vm428_vm1, %v1998_v49  ;;  %905 = vmatprep.mubr.bf16.mxu0 %v2583_v25 }
  0xb4   : > { %792 = vmatprep.mubr.bf16.mxu1 %v2583_v25 }
  0xba   : > { %1513 = vmatmul.mubr.msk.bf16.gmra.mrb[16].mxu0 %vm428_vm1, %v391_v17 }
  0xbb   : > { %1505 = vmatmul.mubr.msk.bf16.gmra.mrb[16].mxu1 %vm428_vm1, %v391_v17  ;;  %915 = vmatprep.mubr.bf16.mxu0 %v2583_v25 }
  0xbc   : > { %802 = vmatprep.mubr.bf16.mxu1 %v2583_v25 }
  0xc2   : > { %1514 = vmatmul.mubr.msk.bf16.gmra.mrb[20].mxu0 %vm428_vm1, %v392_v36 }
  0xc3   : > { %1506 = vmatmul.mubr.msk.bf16.gmra.mrb[20].mxu1 %vm428_vm1, %v392_v36  ;;  %925 = vmatprep.mubr.bf16.mxu0 %v2583_v25  ;;  %v658_v36 = vld [vmem:[%s2579_s5] sm:$0xf] }
  0xc4   : > { %812 = vmatprep.mubr.bf16.mxu1 %v2583_v25 }
  0xca   : > { %1515 = vmatmul.mubr.msk.bf16.gmra.mrb[24].mxu0 %vm428_vm1, %v2016_v2 }
  0xcb   : > { %1507 = vmatmul.mubr.msk.bf16.gmra.mrb[24].mxu1 %vm428_vm1, %v2016_v2  ;;  %935 = vmatprep.mubr.bf16.mxu0 %v2583_v25 }
  0xcc   : > { %822 = vmatprep.mubr.bf16.mxu1 %v2583_v25 }
  0xd2   : > { %1516 = vmatmul.mubr.msk.bf16.gmra.mrb[28].mxu0 %vm428_vm1, %v2024_v5 }
  0xd3   : > { %1508 = vmatmul.mubr.msk.bf16.gmra.mrb[28].mxu1 %vm428_vm1, %v2024_v5  ;;  %945 = vmatprep.mubr.bf16.mxu0 %v2583_v25 }
  0xd4   : > { %832 = vmatprep.mubr.bf16.mxu1 %v2583_v25 }
  0xda   : > { %1517 = vmatmul.mubr.msk.bf16.gmra.mrb[32].mxu0 %vm428_vm1, %v395_v24 }
  0xdb   : > { %1509 = vmatmul.mubr.msk.bf16.gmra.mrb[32].mxu1 %vm428_vm1, %v395_v24  ;;  %955 = vmatprep.mubr.bf16.mxu0 %v2583_v25 }
  0xdc   : > { %842 = vmatprep.mubr.bf16.mxu1 %v2583_v25 }
  0xe2   : > { %1518 = vmatmul.mubr.msk.bf16.gmra.mrb[36].mxu0 %vm428_vm1, %v396_v40 }
  0xe3   : > { %1510 = vmatmul.mubr.msk.bf16.gmra.mrb[36].mxu1 %vm428_vm1, %v396_v40 }
 0x16a   : > { %v1544_v43 = vpop.f32.mrb[0].mxu0 }
 0x16b   : > { %v496_v44 = vadd.f32 %v1544_v43, %v2109_v42  ;;  %v487_v45 = vpop.f32.mrb[1].mxu0 }
 0x16c   : > { %v1545_v46 = vpop.f32.mrb[2].mxu0  ;;  %v488_v53 = vadd.f32 %v2109_v42, %v487_v45  ;;  %v674_v45 = vsub.s32 3, %v661_v26 }
 0x16d   : > { %v1477_v47 = vmul.f32 -1.442695, %v496_v44  ;;  %v2112_v48 = vpop.f32.mrb[3].mxu0  ;;  %v499_v27 = vadd.f32 %v1545_v46, %v2109_v42  ;;  %v662_v44 = vsub.s32 0, %v661_v26 }
 0x16e   : > { %v1552_v49 = vpop.f32.mrb[0].mxu1  ;;  %v1475_v56 = vmul.f32 -1.442695, %v488_v53 }
 0x16f   : > { %1714 = vpow2.f32 %v1477_v47  ;;  %v528_v50 = vadd.f32 %v1552_v49, %v2109_v42  ;;  %v519_v51 = vpop.f32.mrb[1].mxu1  ;;  %v1478_v40 = vmul.f32 -1.442695, %v499_v27  ;;  %v666_v49 = vsub.s32 1, %v661_v26 }
 0x170   : > { %v1553_v52 = vpop.f32.mrb[2].mxu1  ;;  %v520_v58 = vadd.f32 %v2109_v42, %v519_v51  ;;  %v2183_v51 = vrot.slane %v658_v36, %v670_v37 }
 0x171   : > { %v1485_v54 = vmul.f32 -1.442695, %v528_v50  ;;  %v2116_v55 = vpop.f32.mrb[3].mxu1  ;;  %v531_v43 = vadd.f32 %v1553_v52, %v2109_v42  ;;  %v2189_v52 = vrot.slane %v658_v36, %v666_v49 }
 0x172   : > { %v1483_v11 = vmul.f32 -1.442695, %v520_v58 }
 0x173   : > { %1716 = vpow2.f32 %v1485_v54  ;;  %v1486_v53 = vmul.f32 -1.442695, %v531_v43  ;;  %v2185_v54 = vrot.slane %v658_v36, %v662_v44  ;;  %v523_v44 = vadd.f32 %v2109_v42, %v2116_v55 }
 0x174   : > { %1718 = vpow2.f32 %v1475_v56  ;;  %v2187_v56 = vrot.slane %v658_v36, %v674_v45 }
 0x175   : > { %v1548_v57 = vpop.f32.mrb[4].mxu0 }
 0x176   : > { %v2120_v59 = vadd.f32 %v1548_v57, %v2109_v42  ;;  %v503_v60 = vpop.f32.mrb[5].mxu0  ;;  %v1556_v61 = vpop.f32.mrb[4].mxu1 }
 0x177   : > { %v2123_v62 = vadd.f32 %v2109_v42, %v503_v60  ;;  %v2126_v63 = vadd.f32 %v1556_v61, %v2109_v42  ;;  %v1549_v0 = vpop.f32.mrb[6].mxu0  ;;  %v535_v1 = vpop.f32.mrb[5].mxu1 }
 0x178   : > { %v2129_v2 = vadd.f32 %v1549_v0, %v2109_v42  ;;  %v2132_v3 = vadd.f32 %v2109_v42, %v535_v1  ;;  %v506_v4 = vpop.f32.mrb[7].mxu0  ;;  %v1557_v5 = vpop.f32.mrb[6].mxu1  ;;  %v2585_v0 = vmov 3  }
 0x179   : > { %v1715_v6 = vpop.eup %1714  ;;  %v2135_v7 = vadd.f32 %v2109_v42, %v506_v4  ;;  %v2138_v8 = vadd.f32 %v1557_v5, %v2109_v42  ;;  %v538_v9 = vpop.f32.mrb[7].mxu1 }
 0x17a   : > { %v600_v10 = vadd.f32 1.0, %v1715_v6  ;;  %v2141_v12 = vadd.f32 %v2109_v42, %v538_v9 }
 0x17c   : > { %1720 = vrcp.f32 %v600_v10 }
 0x17d   : > { %v1717_v13 = vpop.eup %1716  ;;  %v2143_v14 = vpop.f32.mrb[8].mxu0  ;;  %1722 = vpow2.f32 %v1483_v11 }
 0x17e   : > { %v608_v15 = vadd.f32 1.0, %v1717_v13  ;;  %v2145_v16 = vpop.f32.mrb[8].mxu1  ;;  %v2147_v17 = vpop.f32.mrb[9].mxu0 }
 0x17f   : > { %v2149_v18 = vpop.f32.mrb[9].mxu1  ;;  %v2151_v19 = vpop.f32.mrb[10].mxu0 }
 0x180   : > { %1724 = vrcp.f32 %v608_v15  ;;  %v2153_v21 = vpop.f32.mrb[10].mxu1  ;;  %v2155_v22 = vpop.f32.mrb[11].mxu0 }
 0x181   : > { %v2157_v23 = vpop.f32.mrb[11].mxu1  ;;  %v1719_v24 = vpop.eup %1718 }
 0x182   : > { %v598_v30 = vadd.f32 1.0, %v1719_v24 }
 0x184   : > { %1726 = vrcp.f32 %v598_v30  ;;  %v2581_v30 = vmov 2  }
 0x185   : > { %v2160_v28 = vpop.f32.mrb[12].mxu0  ;;  %1728 = vpow2.f32 %v1478_v40 }
 0x186   : > { %v2162_v29 = vpop.eup %1720  ;;  %v2164_v31 = vpop.f32.mrb[12].mxu1 }
 0x187   : > { %v2166_v32 = vpop.f32.mrb[13].mxu0  ;;  %v2168_v33 = vpop.f32.mrb[13].mxu1  ;;  %978 = vperm.xlu1 %1650, %v2162_v29  }
 0x188   : > { %v2171_v34 = vpop.f32.mrb[14].mxu0  ;;  %v1723_v35 = vpop.eup %1722 }
 0x189   : > { %v2176_v38 = vpop.f32.mrb[14].mxu1  ;;  %v2178_v39 = vpop.f32.mrb[15].mxu0  ;;  %v606_v50 = vadd.f32 1.0, %v1723_v35 }
 0x18a   : > { %v2181_v46 = vpop.f32.mrb[15].mxu1  ;;  %v1725_v47 = vpop.eup %1724 }
 0x18b   : > { %1103 = vperm.xlu0 %1652, %v1725_v47   ;;  %1018 = vperm.xlu1 %1650, %v1725_v47   ;;  %1730 = vrcp.f32 %v606_v50 }
 0x18c   : > { %1732 = vpow2.f32 %v1486_v53 }
 0x18d   : > { %v907_v57 = vpop.f32.mrb[16].mxu0 }
 0x18e   : > { %v2192_v58 = vadd.f32 %v907_v57, %v2183_v51  ;;  %v794_v60 = vpop.f32.mrb[16].mxu1  ;;  %v909_v61 = vpop.f32.mrb[17].mxu0 }
 0x18f   : > { %1655 = vset.pattern.permute.xlu0 %v2585_v0  ;;  %1651 = vset.pattern.permute.xlu1 %v2587_v41  ;;  %v2197_v1 = vadd.f32 %v794_v60, %v2185_v54  ;;  %v2200_v4 = vadd.f32 %v909_v61, %v2187_v56  ;;  %v796_v5 = vpop.f32.mrb[17].mxu1  ;;  %v911_v6 = vpop.f32.mrb[18].mxu0 }
 0x190   : > { %2591 = vst [vmem:[#allocation5_spill] sm:$0xff] %v2192_v58  ;;  %1295 = vperm.xlu0 %1655, %v1725_v47   ;;  %1071 = vperm.xlu1 %1651, %v2162_v29   ;;  %v2204_v9 = vadd.f32 %v796_v5, %v2189_v52  ;;  %v2207_v10 = vadd.f32 %v911_v6, %v2183_v51  ;;  %v798_v11 = vpop.f32.mrb[18].mxu1  ;;  %v913_v13 = vpop.f32.mrb[19].mxu0 }
 0x191   : > { %2592 = vst [vmem:[#allocation6_spill] sm:$0xff] %v2197_v1  ;;  %2593 = vst [vmem:[#allocation7_spill] sm:$0xff] %v2200_v4  ;;  %v2210_v15 = vadd.f32 %v798_v11, %v2185_v54  ;;  %v2213_v20 = vadd.f32 %v913_v13, %v2187_v56  ;;  %v800_v24 = vpop.f32.mrb[19].mxu1  ;;  %v2218_v27 = vpop.eup %1726 }
 0x192   : > { %2594 = vst [vmem:[#allocation8_spill] sm:$0xff] %v2204_v9  ;;  %2595 = vst [vmem:[#allocation9_spill] sm:$0xff] %v2207_v10  ;;  %v2216_v26 = vadd.f32 %v800_v24, %v2189_v52  ;;  %v1729_v43 = vpop.eup %1728 }
 0x193   : > { %2596 = vst [vmem:[#allocation10_spill] sm:$0xff] %v2210_v15  ;;  %2597 = vst [vmem:[#allocation11_spill] sm:$0xff] %v2213_v20  ;;  %v601_v24 = vadd.f32 1.0, %v1729_v43  ;;  %v2607_v15 = vmov 2  }
 0x194   : > { %2598 = vst [vmem:[#allocation12_spill] sm:$0xff] %v2216_v26  ;;  %1656 = vset.pattern.permute.xlu0 %v2583_v25  ;;  %1653 = vset.pattern.permute.xlu1 %v2581_v30 }
 0x195   : > { %1167 = vperm.xlu1 %1653, %v2162_v29   ;;  %968 = vperm.xlu0 %1656, %v2218_v27   ;;  %v917_v35 = vpop.f32.mrb[20].mxu0  ;;  %v1731_v6 = vpop.eup %1730  ;;  %1734 = vrcp.f32 %v601_v24 }
 0x196   : > { %v2225_v36 = vadd.f32 %v917_v35, %v2183_v51  ;;  %v804_v37 = vpop.f32.mrb[20].mxu1  ;;  %v919_v40 = vpop.f32.mrb[21].mxu0 }
 0x197   : > { %v2230_v45 = vadd.f32 %v804_v37, %v2185_v54  ;;  %v2233_v49 = vadd.f32 %v919_v40, %v2187_v56  ;;  %v806_v50 = vpop.f32.mrb[21].mxu1  ;;  %v921_v53 = vpop.f32.mrb[22].mxu0  ;;  %v491_v40 = vadd.f32 %v2109_v42, %v2112_v48 }
 0x198   : > { %2599 = vst [vmem:[#allocation13_spill] sm:$0xff] %v2225_v36  ;;  %v2236_v57 = vadd.f32 %v806_v50, %v2189_v52  ;;  %v2239_v60 = vadd.f32 %v921_v53, %v2183_v51  ;;  %v808_v61 = vpop.f32.mrb[22].mxu1  ;;  %v923_v5 = vpop.f32.mrb[23].mxu0  ;;  %v1484_v50 = vmul.f32 -1.442695, %v523_v44 }
 0x199   : > { %2600 = vst [vmem:[#allocation14_spill] sm:$0xff] %v2230_v45  ;;  %2601 = vst [vmem:[#allocation15_spill] sm:$0xff] %v2233_v49  ;;  %1199 = vperm.xlu1 %1653, %v1725_v47   ;;  %1659 = vset.pattern.permute.xlu0 %v2587_v41  ;;  %v2243_v55 = vadd.f32 %v808_v61, %v2185_v54  ;;  %v2246_v11 = vadd.f32 %v923_v5, %v2187_v56  ;;  %v810_v13 = vpop.f32.mrb[23].mxu1  ;;  %v1733_v37 = vpop.eup %1732  ;;  %v1476_v5 = vmul.f32 -1.442695, %v491_v40 }
 0x19a   : > { %2602 = vst [vmem:[#allocation16_spill] sm:$0xff] %v2239_v60  ;;  %1095 = vperm.xlu0 %1659, %v1731_v6   ;;  %v2249_v35 = vadd.f32 %v810_v13, %v2189_v52  ;;  %v609_v53 = vadd.f32 1.0, %v1733_v37  ;;  %1736 = vpow2.f32 %v1484_v50  ;;  %v1481_v60 = vmul.f32 -1.442695, %v2120_v59 }
 0x19b   : > { %2603 = vst [vmem:[#allocation17_spill] sm:$0xff] %v2243_v55  ;;  %2604 = vst [vmem:[#allocation18_spill] sm:$0xff] %v2246_v11 }
 0x19c   : > { %2605 = vst [vmem:[#allocation19_spill] sm:$0xff] %v2249_v35  ;;  %1738 = vrcp.f32 %v609_v53 }
 0x19d   : > { %1654 = vset.pattern.permute.xlu1 %v2585_v0  ;;  %v2254_v47 = vpop.f32.mrb[24].mxu0  ;;  %1740 = vpow2.f32 %v1476_v5 }
 0x19e   : > { %v2256_v61 = vpop.f32.mrb[24].mxu1  ;;  %1263 = vperm.xlu1 %1654, %v2162_v29   ;;  %v2259_v43 = vpop.f32.mrb[25].mxu0  ;;  %1660 = vset.pattern.permute.xlu0 %v2581_v30 }
 0x19f   : > { %v2262_v13 = vpop.f32.mrb[25].mxu1  ;;  %v2264_v42 = vpop.f32.mrb[26].mxu0  ;;  %1159 = vperm.xlu0 %1660, %v2218_v27  }
 0x1a0   : > { %v2267_v48 = vpop.f32.mrb[26].mxu1  ;;  %v2269_v44 = vpop.f32.mrb[27].mxu0 }
 0x1a1   : > { %v2271_v24 = vpop.f32.mrb[27].mxu1  ;;  %v2286_v53 = vpop.eup %1734 }
 0x1a2   : > { %1657 = vset.pattern.permute.xlu1 %v2583_v25 }
 0x1a3   : > { %1008 = vperm.xlu1 %1657, %v1731_v6   ;;  %1663 = vset.pattern.permute.xlu0 %v2585_v0  ;;  %v2606_v0 = vmov 0  }
 0x1a4   : > { %1287 = vperm.xlu0 %1663, %v1731_v6   ;;  %v1737_v20 = vpop.eup %1736 }
 0x1a5   : > { %v2275_v29 = vpop.f32.mrb[28].mxu0 }
 0x1a6   : > { %v2277_v37 = vpop.f32.mrb[28].mxu1  ;;  %v2279_v40 = vpop.f32.mrb[29].mxu0 }
 0x1a7   : > { %v2281_v50 = vpop.f32.mrb[29].mxu1  ;;  %1658 = vset.pattern.permute.xlu1 %v2587_v41  ;;  %v2284_v30 = vpop.f32.mrb[30].mxu0  ;;  %v607_v41 = vadd.f32 1.0, %v1737_v20 }
 0x1a8   : > { %v2288_v25 = vpop.f32.mrb[30].mxu1  ;;  %v2290_v5 = vpop.f32.mrb[31].mxu0  ;;  %1063 = vperm.xlu1 %1658, %v2218_v27   ;;  %1664 = vset.pattern.permute.xlu0 %v2606_v0 }
 0x1a9   : > { %v2294_v10 = vpop.f32.mrb[31].mxu1  ;;  %983 = vperm.xlu0 %1664, %v2286_v53   ;;  %v2297_v26 = vpop.eup %1738  ;;  %1742 = vrcp.f32 %v607_v41 }
 0x1aa   : > { %v1741_v11 = vpop.eup %1740  ;;  %1744 = vpow2.f32 %v1481_v60 }
 0x1ab   : > { %v599_v36 = vadd.f32 1.0, %v1741_v11 }
 0x1ac   : > { %1661 = vset.pattern.permute.xlu1 %v2607_v15 }
 0x1ad   : > { %1191 = vperm.xlu1 %1661, %v1731_v6   ;;  %1023 = vperm.xlu0 %1664, %v2297_v26   ;;  %v947_v35 = vpop.f32.mrb[32].mxu0  ;;  %1746 = vrcp.f32 %v599_v36 }
 0x1ae   : > { %v834_v55 = vpop.f32.mrb[32].mxu1  ;;  %v2303_v4 = vadd.f32 %v947_v35, %v2183_v51  ;;  %v949_v58 = vpop.f32.mrb[33].mxu0 }
 0x1af   : > { %v2306_v1 = vadd.f32 %v834_v55, %v2185_v54  ;;  %v836_v9 = vpop.f32.mrb[33].mxu1  ;;  %v2309_v20 = vadd.f32 %v949_v58, %v2187_v56  ;;  %v951_v49 = vpop.f32.mrb[34].mxu0  ;;  %v2612_v55 = vmov 3  }
 0x1b0   : > { %2608 = vst [vmem:[#allocation20_spill] sm:$0xff] %v2303_v4  ;;  %v2312_v59 = vadd.f32 %v836_v9, %v2189_v52  ;;  %v838_v6 = vpop.f32.mrb[34].mxu1  ;;  %v2315_v45 = vadd.f32 %v951_v49, %v2183_v51  ;;  %v953_v35 = vpop.f32.mrb[35].mxu0  ;;  %v1489_v4 = vmul.f32 -1.442695, %v2126_v63  ;;  %v2616_v49 = vmov 1  }
 0x1b1   : > { %2609 = vst [vmem:[#allocation21_spill] sm:$0xff] %v2306_v1  ;;  %2610 = vst [vmem:[#allocation22_spill] sm:$0xff] %v2309_v20  ;;  %1662 = vset.pattern.permute.xlu1 %v2612_v55  ;;  %1666 = vset.pattern.permute.xlu0 %v2607_v15  ;;  %v2321_v58 = vadd.f32 %v838_v6, %v2185_v54  ;;  %v840_v11 = vpop.f32.mrb[35].mxu1  ;;  %v2324_v41 = vadd.f32 %v953_v35, %v2187_v56 }
 0x1b2   : > { %2611 = vst [vmem:[#allocation23_spill] sm:$0xff] %v2315_v45  ;;  %1255 = vperm.xlu1 %1662, %v2218_v27   ;;  %1171 = vperm.xlu0 %1666, %v2286_v53   ;;  %v2329_v9 = vadd.f32 %v840_v11, %v2189_v52  ;;  %1748 = vpow2.f32 %v1489_v4 }
 0x1b3   : > { %2613 = vst [vmem:[#allocation24_spill] sm:$0xff] %v2321_v58  ;;  %2614 = vst [vmem:[#allocation25_spill] sm:$0xff] %v2324_v41  ;;  %v1743_v1 = vpop.eup %1742 }
 0x1b4   : > { %2615 = vst [vmem:[#allocation26_spill] sm:$0xff] %v2329_v9 }
 0x1b5   : > { %v957_v63 = vpop.f32.mrb[36].mxu0 }
 0x1b6   : > { %1665 = vset.pattern.permute.xlu1 %v2616_v49  ;;  %1203 = vperm.xlu0 %1666, %v2297_v26   ;;  %v844_v60 = vpop.f32.mrb[36].mxu1  ;;  %v2334_v6 = vadd.f32 %v957_v63, %v2183_v51  ;;  %v959_v35 = vpop.f32.mrb[37].mxu0 }
 0x1b7   : > { %1075 = vperm.xlu1 %1665, %v2286_v53   ;;  %v2338_v27 = vadd.f32 %v844_v60, %v2185_v54  ;;  %v846_v41 = vpop.f32.mrb[37].mxu1  ;;  %v2341_v11 = vadd.f32 %v959_v35, %v2187_v56  ;;  %v961_v4 = vpop.f32.mrb[38].mxu0 }
 0x1b8   : > { %v2344_v36 = vadd.f32 %v846_v41, %v2189_v52  ;;  %v848_v45 = vpop.f32.mrb[38].mxu1  ;;  %v2347_v9 = vadd.f32 %v961_v4, %v2183_v51  ;;  %v963_v63 = vpop.f32.mrb[39].mxu0 }
 0x1b9   : > { %2617 = vst [vmem:[#allocation27_spill] sm:$0xff] %v2341_v11  ;;  %v2350_v58 = vadd.f32 %v848_v45, %v2185_v54  ;;  %v850_v20 = vpop.f32.mrb[39].mxu1  ;;  %v2353_v60 = vadd.f32 %v963_v63, %v2187_v56  ;;  %v1745_v41 = vpop.eup %1744  ;;  %v1479_v11 = vmul.f32 -1.442695, %v2123_v62  ;;  %v1490_v63 = vmul.f32 -1.442695, %v2138_v8 }
 0x1ba   : > { %2618 = vst [vmem:[#allocation28_spill] sm:$0xff] %v2347_v9  ;;  %1669 = vset.pattern.permute.xlu0 %v2606_v0  ;;  %v2357_v35 = vadd.f32 %v850_v20, %v2189_v52  ;;  %v1747_v4 = vpop.eup %1746  ;;  %v604_v9 = vadd.f32 1.0, %v1745_v41 }
 0x1bb   : > { %2619 = vst [vmem:[#allocation29_spill] sm:$0xff] %v2350_v58  ;;  %1107 = vperm.xlu1 %1665, %v2297_v26   ;;  %1013 = vperm.xlu0 %1669, %v1743_v1   ;;  %1750 = vpow2.f32 %v1479_v11  ;;  %v1487_v58 = vmul.f32 -1.442695, %v2132_v3 }
 0x1bc   : > { %v1749_v45 = vpop.eup %1748  ;;  %1752 = vrcp.f32 %v604_v9 }
 0x1bd   : > { %v612_v20 = vadd.f32 1.0, %v1749_v45  ;;  %1754 = vpow2.f32 %v1487_v58 }
 0x1bf   : > { %1667 = vset.pattern.permute.xlu1 %v2612_v55  ;;  %1670 = vset.pattern.permute.xlu0 %v2616_v49  ;;  %1756 = vrcp.f32 %v612_v20  ;;  %v1480_v20 = vmul.f32 -1.442695, %v2135_v7 }
 0x1c0   : > { %1267 = vperm.xlu1 %1667, %v2286_v53   ;;  %1067 = vperm.xlu0 %1670, %v1747_v4  }
 0x1c4   : > { %1299 = vperm.xlu1 %1667, %v2297_v26   ;;  %1673 = vset.pattern.permute.xlu0 %v2607_v15  ;;  %v1482_v26 = vmul.f32 -1.442695, %v2129_v2 }
 0x1c5   : > { %1195 = vperm.xlu0 %1673, %v1743_v1   ;;  %v1751_v62 = vpop.eup %1750 }
 0x1c6   : > { %v1753_v3 = vpop.eup %1752  ;;  %v602_v11 = vadd.f32 1.0, %v1751_v62 }
 0x1c7   : > { %v1755_v53 = vpop.eup %1754 }
 0x1c8   : > { %1668 = vset.pattern.permute.xlu1 %v2606_v0  ;;  %1758 = vrcp.f32 %v602_v11  ;;  %v610_v9 = vadd.f32 1.0, %v1755_v53 }
 0x1c9   : > { %973 = vperm.xlu1 %1668, %v1747_v4   ;;  %1674 = vset.pattern.permute.xlu0 %v2612_v55  ;;  %v2372_v58 = vpop.eup %1756  ;;  %1760 = vpow2.f32 %v1482_v26 }
 0x1ca   : > { %1259 = vperm.xlu0 %1674, %v1747_v4   ;;  %1762 = vrcp.f32 %v610_v9 }
 0x1cb   : > { %1764 = vpow2.f32 %v1490_v63 }
 0x1cd   : > { %1671 = vset.pattern.permute.xlu1 %v2616_v49 }
 0x1ce   : > { %1099 = vperm.xlu1 %1671, %v1743_v1   ;;  %1677 = vset.pattern.permute.xlu0 %v2616_v49 }
 0x1cf   : > { %1087 = vperm.xlu0 %1677, %v1753_v3  }
 0x1d2   : > { %1672 = vset.pattern.permute.xlu1 %v2607_v15  ;;  %v1759_v2 = vpop.eup %1758 }
 0x1d3   : > { %1163 = vperm.xlu1 %1672, %v1747_v4   ;;  %1119 = vperm.xlu0 %1677, %v2372_v58   ;;  %v1761_v41 = vpop.eup %1760 }
 0x1d4   : > { %v1763_v8 = vpop.eup %1762  ;;  %v605_v4 = vadd.f32 1.0, %v1761_v41 }
 0x1d5   : > { %v1765_v45 = vpop.eup %1764 }
 0x1d6   : > { %1766 = vrcp.f32 %v605_v4  ;;  %v613_v62 = vadd.f32 1.0, %v1765_v45 }
 0x1d7   : > { %1675 = vset.pattern.permute.xlu1 %v2612_v55  ;;  %1679 = vset.pattern.permute.xlu0 %v2612_v55  ;;  %1768 = vpow2.f32 %v1480_v20 }
 0x1d8   : > { %1291 = vperm.xlu1 %1675, %v1743_v1   ;;  %1279 = vperm.xlu0 %1679, %v1753_v3   ;;  %v1488_v1 = vmul.f32 -1.442695, %v2141_v12  ;;  %1770 = vrcp.f32 %v613_v62 }
 0x1da   : > { %1772 = vpow2.f32 %v1488_v1  ;;  %v785_v1 = vadd.f32 %v2164_v31, %v2185_v54 }
 0x1dc   : > { %1676 = vset.pattern.permute.xlu1 %v2606_v0  ;;  %1681 = vset.pattern.permute.xlu0 %v2616_v49 }
 0x1dd   : > { %998 = vperm.xlu1 %1676, %v1753_v3   ;;  %1079 = vperm.xlu0 %1681, %v1759_v2  }
 0x1e0   : > { %v1767_v7 = vpop.eup %1766 }
 0x1e1   : > { %1038 = vperm.xlu1 %1676, %v2372_v58   ;;  %1111 = vperm.xlu0 %1681, %v1763_v8   ;;  %v1769_v11 = vpop.eup %1768 }
 0x1e2   : > { %v2389_v12 = vpop.eup %1770  ;;  %v603_v53 = vadd.f32 1.0, %v1769_v11 }
 0x1e4   : > { %v1773_v26 = vpop.eup %1772  ;;  %1774 = vrcp.f32 %v603_v53 }
 0x1e5   : > { %1678 = vset.pattern.permute.xlu1 %v2607_v15  ;;  %1683 = vset.pattern.permute.xlu0 %v2612_v55 }
 0x1e6   : > { %1183 = vperm.xlu1 %1678, %v1753_v3   ;;  %1271 = vperm.xlu0 %1683, %v1759_v2   ;;  %v611_v3 = vadd.f32 1.0, %v1773_v26  ;;  %v898_v26 = vadd.f32 %v2160_v28, %v2183_v51 }
 0x1e8   : > { %1776 = vrcp.f32 %v611_v3 }
 0x1ea   : > { %1215 = vperm.xlu1 %1678, %v2372_v58   ;;  %1303 = vperm.xlu0 %1683, %v1763_v8  }
 0x1ee   : > { %1680 = vset.pattern.permute.xlu1 %v2606_v0  ;;  %1684 = vset.pattern.permute.xlu0 %v2606_v0  ;;  %v1775_v9 = vpop.eup %1774 }
 0x1ef   : > { %988 = vperm.xlu1 %1680, %v1759_v2   ;;  %1003 = vperm.xlu0 %1684, %v1767_v7  }
 0x1f2   : > { %v1777_v63 = vpop.eup %1776 }
 0x1f3   : > { %1028 = vperm.xlu1 %1680, %v1763_v8   ;;  %1043 = vperm.xlu0 %1684, %v2389_v12  }
 0x1f7   : > { %1682 = vset.pattern.permute.xlu1 %v2607_v15  ;;  %1686 = vset.pattern.permute.xlu0 %v2607_v15 }
 0x1f8   : > { %1175 = vperm.xlu1 %1682, %v1759_v2   ;;  %1187 = vperm.xlu0 %1686, %v1767_v7   ;;  %v825_v2 = vadd.f32 %v2277_v37, %v2185_v54  ;;  %v787_v37 = vadd.f32 %v2168_v33, %v2189_v52 }
 0x1fc   : > { %1207 = vperm.xlu1 %1682, %v1763_v8   ;;  %1219 = vperm.xlu0 %1686, %v2389_v12   ;;  %v827_v8 = vadd.f32 %v2281_v50, %v2189_v52 }
 0x200   : > { %1685 = vset.pattern.permute.xlu1 %v2616_v49  ;;  %1688 = vset.pattern.permute.xlu0 %v2606_v0 }
 0x201   : > { %1091 = vperm.xlu1 %1685, %v1767_v7   ;;  %993 = vperm.xlu0 %1688, %v1775_v9  }
 0x205   : > { %1123 = vperm.xlu1 %1685, %v2389_v12   ;;  %1033 = vperm.xlu0 %1688, %v1777_v63  }
 0x206   : > { %v979_v41 = vpop.permute.xlu1 %978 }
 0x209   : > { %1687 = vset.pattern.permute.xlu1 %v2612_v55  ;;  %1690 = vset.pattern.permute.xlu0 %v2607_v15  ;;  %v1048_v15 = vmul.f32 %v979_v41, %v785_v1 }
 0x20a   : > { %v1104_v4 = vpop.permute.xlu0 %1103  ;;  %v1019_v45 = vpop.permute.xlu1 %1018  ;;  %1283 = vperm.xlu1 %1687, %v1767_v7   ;;  %1179 = vperm.xlu0 %1690, %v1775_v9  }
 0x20b   : > { %v1136_v0 = vmul.f32 %v1104_v4, %v827_v8  ;;  %v1056_v20 = vmul.f32 %v1019_v45, %v825_v2  ;;  %v940_v8 = vadd.f32 %v2279_v40, %v2187_v56 }
 0x20d   : > { %v1152_v62 = vadd.f32 %v1136_v0, %v1056_v20  ;;  %v900_v0 = vadd.f32 %v2166_v32, %v2187_v56 }
 0x20e   : > { %1689 = vset.pattern.permute.xlu1 %v2616_v49  ;;  %1211 = vperm.xlu0 %1690, %v1777_v63   ;;  %v938_v49 = vadd.f32 %v2275_v29, %v2183_v51 }
 0x20f   : > { %v1296_v50 = vpop.permute.xlu0 %1295  ;;  %v1072_v11 = vpop.permute.xlu1 %1071  ;;  %1083 = vperm.xlu1 %1689, %v1775_v9  }
 0x210   : > { %v1128_v53 = vmul.f32 %v1072_v11, %v787_v37 }
 0x212   : > { %v1144_v7 = vadd.f32 %v1128_v53, %v1048_v15  ;;  %1692 = vset.pattern.permute.xlu0 %v2612_v55  ;;  %v775_v15 = vadd.f32 %v2145_v16, %v2185_v54  ;;  %v777_v53 = vadd.f32 %v2149_v18, %v2189_v52  ;;  %v930_v18 = vadd.f32 %v2259_v43, %v2187_v56 }
 0x213   : > { %1115 = vperm.xlu1 %1689, %v1777_v63   ;;  %1311 = vperm.xlu0 %1692, %v2372_v58   ;;  %v1328_v58 = vmul.f32 %v1296_v50, %v940_v8 }
 0x214   : > { %v1168_v31 = vpop.permute.xlu1 %1167  ;;  %v969_v33 = vpop.permute.xlu0 %968 }
 0x215   : > { %v1224_v3 = vmul.f32 %v1168_v31, %v898_v26 }
 0x217   : > { %v1240_v2 = vadd.f32 %v1224_v3, %v1144_v7  ;;  %1691 = vset.pattern.permute.xlu1 %v2612_v55  ;;  %v815_v55 = vadd.f32 %v2256_v61, %v2185_v54  ;;  %v1046_v61 = vmul.f32 %v969_v33, %v775_v15 }
 0x218   : > { %v1200_v41 = vpop.permute.xlu1 %1199  ;;  %1275 = vperm.xlu1 %1691, %v1775_v9   ;;  %v817_v9 = vadd.f32 %v2262_v13, %v2189_v52 }
 0x219   : > { %v1232_v28 = vmul.f32 %v1200_v41, %v938_v49  ;;  %v1096_v4 = vpop.permute.xlu0 %1095  ;;  %v928_v49 = vadd.f32 %v2254_v47, %v2183_v51  ;;  %v789_v47 = vadd.f32 %v2176_v38, %v2185_v54 }
 0x21b   : > { %v1248_v45 = vadd.f32 %v1232_v28, %v1152_v62 }
 0x21c   : > { %1307 = vperm.xlu1 %1691, %v1777_v63   ;;  %v1134_v63 = vmul.f32 %v1096_v4, %v817_v9  ;;  %v831_v9 = vadd.f32 %v2294_v10, %v2189_v52 }
 0x21d   : > { %v1344_v20 = vadd.f32 %v1328_v58, %v1248_v45  ;;  %v1264_v29 = vpop.permute.xlu1 %1263 }
 0x21e   : > { %v1320_v1 = vmul.f32 %v1264_v29, %v900_v0  ;;  %v1160_v37 = vpop.permute.xlu0 %1159  ;;  %v791_v29 = vadd.f32 %v2181_v46, %v2189_v52  ;;  %v942_v46 = vadd.f32 %v2284_v30, %v2183_v51 }
 0x21f   : > { %1360 = vst [vmem:[%s2423_s10 + $0x50] sm:$0xff] %v1344_v20 }
 0x220   : > { %v1336_v40 = vadd.f32 %v1320_v1, %v1240_v2  ;;  %1315 = vperm.xlu1 %1691, %v2389_v12   ;;  %v888_v12 = vadd.f32 %v2143_v14, %v2183_v51  ;;  %v890_v14 = vadd.f32 %v2147_v17, %v2187_v56 }
 0x222   : > { %1352 = vst [vmem:[%s2423_s10 + $0x10] sm:$0xff] %v1336_v40  ;;  %v1009_v32 = vpop.permute.xlu1 %1008  ;;  %v1222_v13 = vmul.f32 %v1160_v37, %v888_v12  ;;  %v902_v37 = vadd.f32 %v2171_v34, %v2183_v51 }
 0x223   : > { %v1054_v62 = vmul.f32 %v1009_v32, %v815_v55  ;;  %v1288_v50 = vpop.permute.xlu0 %1287  ;;  %v829_v55 = vadd.f32 %v2288_v25, %v2185_v54  ;;  %v904_v25 = vadd.f32 %v2178_v39, %v2187_v56 }
 0x224   : > { %v1326_v28 = vmul.f32 %v1288_v50, %v930_v18 }
 0x225   : > { %v1150_v11 = vadd.f32 %v1134_v63, %v1054_v62 }
 0x227   : > { %v1064_v7 = vpop.permute.xlu1 %1063 }
 0x228   : > { %v1126_v26 = vmul.f32 %v1064_v7, %v777_v53  ;;  %v984_v31 = vpop.permute.xlu0 %983 }
 0x229   : > { %v1049_v40 = vmul.f32 %v984_v31, %v789_v47 }
 0x22a   : > { %v1142_v3 = vadd.f32 %v1126_v26, %v1046_v61  ;;  %v944_v26 = vadd.f32 %v2290_v5, %v2187_v56  ;;  %v819_v5 = vadd.f32 %v2267_v48, %v2185_v54 }
 0x22c   : > { %v1192_v2 = vpop.permute.xlu1 %1191  ;;  %v1024_v41 = vpop.permute.xlu0 %1023  ;;  %v1238_v16 = vadd.f32 %v1222_v13, %v1142_v3 }
 0x22d   : > { %v1230_v8 = vmul.f32 %v1192_v2, %v928_v49  ;;  %v1057_v50 = vmul.f32 %v1024_v41, %v829_v55  ;;  %v779_v2 = vadd.f32 %v2153_v21, %v2185_v54  ;;  %v781_v41 = vadd.f32 %v2157_v23, %v2189_v52 }
 0x22f   : > { %v1246_v4 = vadd.f32 %v1230_v8, %v1150_v11 }
 0x231   : > { %v1342_v33 = vadd.f32 %v1326_v28, %v1246_v4  ;;  %v1256_v58 = vpop.permute.xlu1 %1255  ;;  %v1172_v45 = vpop.permute.xlu0 %1171  ;;  %v821_v4 = vadd.f32 %v2271_v24, %v2189_v52  ;;  %v894_v52 = vadd.f32 %v2155_v22, %v2187_v56 }
 0x232   : > { %v1318_v0 = vmul.f32 %v1256_v58, %v890_v14  ;;  %v1225_v32 = vmul.f32 %v1172_v45, %v902_v37 }
 0x233   : > { %1358 = vst [vmem:[%s2423_s10 + $0x40] sm:$0xff] %v1342_v33  ;;  %v932_v33 = vadd.f32 %v2264_v42, %v2183_v51  ;;  %v934_v42 = vadd.f32 %v2269_v44, %v2187_v56 }
 0x234   : > { %v1334_v20 = vadd.f32 %v1318_v0, %v1238_v16 }
 0x235   : > { %v1204_v1 = vpop.permute.xlu0 %1203 }
 0x236   : > { %1350 = vst [vmem:[%s2423_s10] sm:$0xff] %v1334_v20  ;;  %v1076_v43 = vpop.permute.xlu1 %1075  ;;  %v1233_v34 = vmul.f32 %v1204_v1, %v942_v46  ;;  %v892_v20 = vadd.f32 %v2151_v19, %v2183_v51 }
 0x237   : > { %v1129_v17 = vmul.f32 %v1076_v43, %v791_v29 }
 0x239   : > { %v1145_v63 = vadd.f32 %v1129_v17, %v1049_v40 }
 0x23a   : > { %v1108_v38 = vpop.permute.xlu1 %1107  ;;  %v1014_v62 = vpop.permute.xlu0 %1013 }
 0x23b   : > { %v1137_v11 = vmul.f32 %v1108_v38, %v831_v9  ;;  %v1241_v15 = vadd.f32 %v1225_v32, %v1145_v63  ;;  %v1055_v21 = vmul.f32 %v1014_v62, %v819_v5  ;;  %v2620_v32 = vld [vmem:[#allocation14_spill] sm:$0xff] }
 0x23d   : > { %v1153_v53 = vadd.f32 %v1137_v11, %v1057_v50 }
 0x23f   : > { %v1268_v7 = vpop.permute.xlu1 %1267  ;;  %v1068_v12 = vpop.permute.xlu0 %1067  ;;  %v1249_v10 = vadd.f32 %v1233_v34, %v1153_v53  ;;  %v2622_v53 = vld [vmem:[#allocation15_spill] sm:$0xff] }
 0x240   : > { %v1321_v61 = vmul.f32 %v1268_v7, %v904_v25  ;;  %v1127_v16 = vmul.f32 %v1068_v12, %v781_v41 }
 0x242   : > { %v1337_v31 = vadd.f32 %v1321_v61, %v1241_v15  ;;  %v2621_v15 = vld [vmem:[#allocation13_spill] sm:$0xff] }
 0x243   : > { %v1300_v13 = vpop.permute.xlu1 %1299 }
 0x244   : > { %1353 = vst [vmem:[%s2423_s10 + $0x18] sm:$0xff] %v1337_v31  ;;  %v1329_v30 = vmul.f32 %v1300_v13, %v944_v26  ;;  %v1196_v3 = vpop.permute.xlu0 %1195 }
 0x245   : > { %v1231_v23 = vmul.f32 %v1196_v3, %v932_v33 }
 0x246   : > { %v1345_v49 = vadd.f32 %v1329_v30, %v1249_v10 }
 0x248   : > { %1361 = vst [vmem:[%s2423_s10 + $0x58] sm:$0xff] %v1345_v49  ;;  %v974_v39 = vpop.permute.xlu1 %973 }
 0x249   : > { %v1047_v18 = vmul.f32 %v974_v39, %v779_v2  ;;  %v1260_v8 = vpop.permute.xlu0 %1259 }
 0x24a   : > { %v1319_v24 = vmul.f32 %v1260_v8, %v894_v52 }
 0x24b   : > { %v1143_v28 = vadd.f32 %v1127_v16, %v1047_v18  ;;  %v2625_v16 = vld [vmem:[#allocation21_spill] sm:$0xff] }
 0x24d   : > { %v1100_v14 = vpop.permute.xlu1 %1099 }
 0x24e   : > { %v1135_v58 = vmul.f32 %v1100_v14, %v821_v4  ;;  %v1088_v45 = vpop.permute.xlu0 %1087  ;;  %v2627_v14 = vld [vmem:[#allocation7_spill] sm:$0xff] }
 0x24f   : > { %v1132_v9 = vmul.f32 %v1088_v45, %v2236_v57 }
 0x250   : > { %v1151_v0 = vadd.f32 %v1135_v58, %v1055_v21 }
 0x252   : > { %v1164_v47 = vpop.permute.xlu1 %1163  ;;  %v1120_v29 = vpop.permute.xlu0 %1119  ;;  %v1247_v54 = vadd.f32 %v1231_v23, %v1151_v0  ;;  %v2628_v0 = vld [vmem:[#allocation20_spill] sm:$0xff] }
 0x253   : > { %v1223_v48 = vmul.f32 %v1164_v47, %v892_v20  ;;  %v1140_v46 = vmul.f32 %v1120_v29, %v2344_v36  ;;  %v2623_v36 = vld [vmem:[#allocation8_spill] sm:$0xff]  ;;  %v2629_v47 = vld [vmem:[#allocation22_spill] sm:$0xff] }
 0x255   : > { %v1239_v1 = vadd.f32 %v1223_v48, %v1143_v28 }
 0x257   : > { %v1335_v43 = vadd.f32 %v1319_v24, %v1239_v1  ;;  %v1292_v37 = vpop.permute.xlu1 %1291  ;;  %v1280_v40 = vpop.permute.xlu0 %1279  ;;  %v2630_v24 = vld [vmem:[#allocation17_spill] sm:$0xff] }
 0x258   : > { %v1327_v17 = vmul.f32 %v1292_v37, %v934_v42  ;;  %v1324_v25 = vmul.f32 %v1280_v40, %v2622_v53  ;;  %v2631_v42 = vld [vmem:[#allocation19_spill] sm:$0xff]  ;;  %v2632_v37 = vld [vmem:[#allocation16_spill] sm:$0xff] }
 0x259   : > { %1351 = vst [vmem:[%s2423_s10 + $0x8] sm:$0xff] %v1335_v43 }
 0x25a   : > { %v1343_v55 = vadd.f32 %v1327_v17, %v1247_v54 }
 0x25c   : > { %1359 = vst [vmem:[%s2423_s10 + $0x48] sm:$0xff] %v1343_v55  ;;  %v999_v19 = vpop.permute.xlu1 %998  ;;  %v1080_v51 = vpop.permute.xlu0 %1079 }
 0x25d   : > { %v1052_v63 = vmul.f32 %v999_v19, %v2620_v32  ;;  %v1130_v30 = vmul.f32 %v1080_v51, %v2623_v36  ;;  %v2633_v51 = vld [vmem:[#allocation29_spill] sm:$0xff]  ;;  %v2639_v36 = vld [vmem:[#allocation24_spill] sm:$0xff] }
 0x25f   : > { %v1148_v22 = vadd.f32 %v1132_v9, %v1052_v63 }
 0x260   : > { %v1039_v38 = vpop.permute.xlu1 %1038  ;;  %v1112_v62 = vpop.permute.xlu0 %1111 }
 0x261   : > { %v1060_v56 = vmul.f32 %v1039_v38, %v2338_v27  ;;  %v2624_v27 = vld [vmem:[#allocation6_spill] sm:$0xff]  ;;  %v1138_v39 = vmul.f32 %v1112_v62, %v2312_v59 }
 0x263   : > { %v1156_v44 = vadd.f32 %v1140_v46, %v1060_v56 }
 0x265   : > { %v1184_v50 = vpop.permute.xlu1 %1183  ;;  %v1272_v11 = vpop.permute.xlu0 %1271 }
 0x266   : > { %v1228_v34 = vmul.f32 %v1184_v50, %v2621_v15  ;;  %v1322_v33 = vmul.f32 %v1272_v11, %v2627_v14  ;;  %v2635_v50 = vld [vmem:[#allocation18_spill] sm:$0xff] }
 0x268   : > { %v1244_v7 = vadd.f32 %v1228_v34, %v1148_v22  ;;  %v2634_v22 = vld [vmem:[#allocation28_spill] sm:$0xff] }
 0x269   : > { %v1216_v12 = vpop.permute.xlu1 %1215  ;;  %v1304_v57 = vpop.permute.xlu0 %1303 }
 0x26a   : > { %v1340_v10 = vadd.f32 %v1324_v25, %v1244_v7  ;;  %v1236_v61 = vmul.f32 %v1216_v12, %v2334_v6  ;;  %v2626_v6 = vld [vmem:[#allocation5_spill] sm:$0xff]  ;;  %v1330_v29 = vmul.f32 %v1304_v57, %v2629_v47  ;;  %v2636_v25 = vld [vmem:[#allocation10_spill] sm:$0xff]  ;;  %v2637_v12 = vld [vmem:[#allocation12_spill] sm:$0xff] }
 0x26c   : > { %1356 = vst [vmem:[%s2423_s10 + $0x30] sm:$0xff] %v1340_v10  ;;  %v1252_v26 = vadd.f32 %v1236_v61, %v1156_v44  ;;  %v2638_v10 = vld [vmem:[#allocation9_spill] sm:$0xff] }
 0x26e   : > { %v989_v31 = vpop.permute.xlu1 %988  ;;  %v1004_v13 = vpop.permute.xlu0 %1003 }
 0x26f   : > { %v1050_v3 = vmul.f32 %v989_v31, %v2624_v27  ;;  %v1053_v1 = vmul.f32 %v1004_v13, %v2630_v24  ;;  %v2640_v27 = vld [vmem:[#allocation26_spill] sm:$0xff] }
 0x271   : > { %v1146_v49 = vadd.f32 %v1130_v30, %v1050_v3 }
 0x272   : > { %v1029_v2 = vpop.permute.xlu1 %1028  ;;  %v1044_v41 = vpop.permute.xlu0 %1043 }
 0x273   : > { %v1058_v18 = vmul.f32 %v1029_v2, %v2625_v16  ;;  %v1061_v9 = vmul.f32 %v1044_v41, %v2633_v51 }
 0x275   : > { %v1154_v8 = vadd.f32 %v1138_v39, %v1058_v18  ;;  %v2642_v39 = vld [vmem:[#allocation23_spill] sm:$0xff] }
 0x277   : > { %v1176_v28 = vpop.permute.xlu1 %1175  ;;  %v1188_v5 = vpop.permute.xlu0 %1187 }
 0x278   : > { %v1226_v4 = vmul.f32 %v1176_v28, %v2626_v6  ;;  %v1229_v40 = vmul.f32 %v1188_v5, %v2632_v37  ;;  %v2643_v6 = vld [vmem:[#allocation11_spill] sm:$0xff] }
 0x27a   : > { %v1242_v21 = vadd.f32 %v1226_v4, %v1146_v49  ;;  %v2641_v49 = vld [vmem:[#allocation27_spill] sm:$0xff] }
 0x27b   : > { %v1208_v58 = vpop.permute.xlu1 %1207  ;;  %v1220_v45 = vpop.permute.xlu0 %1219 }
 0x27c   : > { %v1338_v23 = vadd.f32 %v1322_v33, %v1242_v21  ;;  %v1234_v20 = vmul.f32 %v1208_v58, %v2628_v0  ;;  %v1237_v38 = vmul.f32 %v1220_v45, %v2634_v22  ;;  %v2644_v21 = vld [vmem:[#allocation25_spill] sm:$0xff] }
 0x27e   : > { %1354 = vst [vmem:[%s2423_s10 + $0x20] sm:$0xff] %v1338_v23  ;;  %v1250_v59 = vadd.f32 %v1234_v20, %v1154_v8 }
 0x280   : > { %v1346_v54 = vadd.f32 %v1330_v29, %v1250_v59  ;;  %v1092_v52 = vpop.permute.xlu1 %1091  ;;  %v994_v48 = vpop.permute.xlu0 %993 }
 0x281   : > { %v1133_v43 = vmul.f32 %v1092_v52, %v2631_v42  ;;  %v1051_v7 = vmul.f32 %v994_v48, %v2636_v25 }
 0x282   : > { %1362 = vst [vmem:[%s2423_s10 + $0x60] sm:$0xff] %v1346_v54 }
 0x283   : > { %v1149_v17 = vadd.f32 %v1133_v43, %v1053_v1 }
 0x284   : > { %v1124_v55 = vpop.permute.xlu1 %1123  ;;  %v1034_v19 = vpop.permute.xlu0 %1033 }
 0x285   : > { %v1141_v32 = vmul.f32 %v1124_v55, %v2357_v35  ;;  %v1245_v63 = vadd.f32 %v1229_v40, %v1149_v17  ;;  %v1059_v30 = vmul.f32 %v1034_v19, %v2639_v36 }
 0x287   : > { %v1157_v62 = vadd.f32 %v1141_v32, %v1061_v9 }
 0x289   : > { %v1284_v46 = vpop.permute.xlu1 %1283  ;;  %v1180_v56 = vpop.permute.xlu0 %1179  ;;  %v1253_v44 = vadd.f32 %v1237_v38, %v1157_v62 }
 0x28a   : > { %v1325_v11 = vmul.f32 %v1284_v46, %v2635_v50  ;;  %v1227_v35 = vmul.f32 %v1180_v56, %v2638_v10 }
 0x28c   : > { %v1341_v15 = vadd.f32 %v1325_v11, %v1245_v63 }
 0x28d   : > { %v1212_v34 = vpop.permute.xlu0 %1211 }
 0x28e   : > { %1357 = vst [vmem:[%s2423_s10 + $0x38] sm:$0xff] %v1341_v15  ;;  %v1084_v53 = vpop.permute.xlu1 %1083  ;;  %v1235_v16 = vmul.f32 %v1212_v34, %v2642_v39 }
 0x28f   : > { %v1131_v57 = vmul.f32 %v1084_v53, %v2637_v12 }
 0x291   : > { %v1147_v61 = vadd.f32 %v1131_v57, %v1051_v7 }
 0x292   : > { %v1116_v31 = vpop.permute.xlu1 %1115  ;;  %v1312_v13 = vpop.permute.xlu0 %1311 }
 0x293   : > { %v1139_v3 = vmul.f32 %v1116_v31, %v2640_v27  ;;  %v1332_v2 = vmul.f32 %v1312_v13, %v2641_v49  ;;  %v1243_v41 = vadd.f32 %v1227_v35, %v1147_v61 }
 0x295   : > { %v1155_v18 = vadd.f32 %v1139_v3, %v1059_v30  ;;  %v1348_v8 = vadd.f32 %v1332_v2, %v1252_v26 }
 0x297   : > { %1364 = vst [vmem:[%s2423_s10 + $0x70] sm:$0xff] %v1348_v8  ;;  %v1276_v28 = vpop.permute.xlu1 %1275  ;;  %v1251_v5 = vadd.f32 %v1235_v16, %v1155_v18 }
 0x298   : > { %v1323_v4 = vmul.f32 %v1276_v28, %v2643_v6 }
 0x29a   : > { %v1339_v14 = vadd.f32 %v1323_v4, %v1243_v41 }
 0x29b   : > { %v1308_v33 = vpop.permute.xlu1 %1307 }
 0x29c   : > { %1355 = vst [vmem:[%s2423_s10 + $0x28] sm:$0xff] %v1339_v14  ;;  %v1331_v58 = vmul.f32 %v1308_v33, %v2644_v21 }
 0x29e   : > { %v1347_v45 = vadd.f32 %v1331_v58, %v1251_v5 }
 0x29f   : > { %v1316_v23 = vpop.permute.xlu1 %1315 }
 0x2a0   : > { %1363 = vst [vmem:[%s2423_s10 + $0x68] sm:$0xff] %v1347_v45  ;;  %v1333_v26 = vmul.f32 %v1316_v23, %v2353_v60 }
 0x2a2   : > { %v1349_v0 = vadd.f32 %v1333_v26, %v1253_v44 }
 0x2a4   : > { %1365 = vst [vmem:[%s2423_s10 + $0x78] sm:$0xff] %v1349_v0 }
 0x2a5   : > { %1791 = shalt.err (!%p1788_p3)
}
 0x2a6   : > { %s1792_s19 = scalar_lea.hbm %s2526_s15, 2048  ;;  %s1796_s28 = scalar_lea.hbm %s2580_s6, 8192 }
 0x2a7   : > { %p1793_p4 = scmp.ne.s32.totalorder %s2526_s15, %s1792_s19  ;;  %p1797_p9 = scmp.lt.u32.totalorder %s2526_s15, %s2580_s6 }
 0x2a8   : > { %p1798_p10 = scmp.lt.u32.totalorder %s1796_s28, %s1792_s19  ;;  %p1800_p12 = scmp.lt.u32.totalorder %s1792_s19, %s2526_s15 }
 0x2a9   : > { %p1794_p7 = pnand %p1793_p4, %p1923_p5 }
 0x2aa   : > { %p1799_p11 = por %p1798_p10, %p1797_p9 }
 0x2ab   : > { %p1795_p8 = pneg %p1794_p7 }
 0x2ac   : > { %p1801_p13 = por %p1800_p12, %p1799_p11 }
 0x2ae   : > { %p1802_p0 = pnand %p1801_p13, %p1795_p8 }
 0x2b0   : > { %1805 = shalt.err (!%p1802_p0)
}
 0x2b1   : > { %s1848_s11 = smov 128   ;;  %s1849_s9 = smov 8  }
 0x2b2   : > { %1564 = dma.vmem_to_hbm [thread:$0]  (%p1923_p5), %s2528_s12, 2048, %s2526_s15, %s2533_s16, %s1848_s11, %s1848_s11, %s1849_s9  }
 0x2b3 PF: > { %p1570_p1 = scmp.ge.s32.totalorder %s1840_s24, 2  ;;  %s1395_s14 = sand.u32 1, %s1828_s21  }
 0x2b4   : > { %s1396_s25 = scalar_lea.sflag [#allocation3], %s1395_s14 }
 0x2b5   : > { %p1567_p2 = pnand %p1570_p1, %p1927_p6 }
 0x2b7   : > { %1823 = dma.done.wait (!%p1567_p2), %s1396_s25, 2048  }
 0x2b8   : > { %1825 = vsyncadd (!%p1567_p2), %s1396_s25, 4294965248  ;;  %p16_p3 = scmp.ge.s32.totalorder %s1910_s27, 6   ;;  %s2645_s21 = smov %s1832_s22 }
 0x2b9   : > { %s2646_s22 = smov %s1836_s23  ;;  %s2647_s23 = smov %s1921_s30 }
 0x2ba   : > { %s2648_s24 = smov %s1910_s27  ;;  %18 = sbr.rel (!%p16_p3) target bundleno = 3 (0x3), region = 82 }
 0x2c1   :  { %1401 = vsyncpa [#allocation3], 1 }
 0x2c2   :  { %1403 = vsyncpa [#allocation3 + $0x1], 1 }

</bundles_post_ra>
